<compile_context>
chip_gen: v7x
topology: tpu7x:2x2x1
jax: 0.10.0
libtpu: 0.0.40
codegen_flags: <defaults>
</compile_context>

<pallas_src>
import jax
import jax.numpy as jnp
from jax.experimental import pallas as pl
from jax.experimental.pallas import tpu as pltpu

# Compile-time Sobel constants (match SobelFilter.__init__).
_SOBEL_X = ((1.0, 0.0, -1.0),
            (2.0, 0.0, -2.0),
            (1.0, 0.0, -1.0))
_SOBEL_Y = ((1.0, 2.0, 1.0),
            (0.0, 0.0, 0.0),
            (-1.0, 2.0, -1.0))


def _round_up(x, m):
    return ((x + m - 1) // m) * m


def _sobel_kernel(xm_ref, xh_ref, gx_ref, gy_ref, g_ref, grad_ref, seam_ref):
    # xm_ref:   (BN, TH, W)   main input tile, rows [t*TH, t*TH+TH)
    # xh_ref:   (BN, 8,  W)   halo = first 8 rows of the next tile (clamped)
    # outputs:  (BN, TH, WO)  with WO = W - 2   (partial edge blocks masked)
    # seam_ref: (BN, 16, W)   scratch for the bottom-of-tile 3-row stencil
    _, th, wo = gx_ref.shape

    def emit(x0, x1, x2, row0, nrows):
        x0 = x0.astype(jnp.float32)
        x1 = x1.astype(jnp.float32)
        x2 = x2.astype(jnp.float32)
        # Vertical (sublane) combines — short live ranges.
        s = x0 + x2                          # [1, 0, 1]
        v = s + 2.0 * x1                     # [1, 2, 1]      (x1 dead)
        d = x0 - x2                          # [1, 0, -1]     (x0/x2 dead)
        # Horizontal (lane) combines; width W -> WO = W - 2.
        gx = v[:, :, 0:wo] - v[:, :, 2:]                              # (v dead)
        gx_ref[:, pl.ds(row0, nrows), :] = gx.astype(gx_ref.dtype)
        gy = d[:, :, 0:wo] + d[:, :, 2:] + 2.0 * s[:, :, 1:1 + wo]    # (d/s dead)
        gy_ref[:, pl.ds(row0, nrows), :] = gy.astype(gy_ref.dtype)
        g_ref[:, pl.ds(row0, nrows), :] = (gx * gx + gy * gy).astype(g_ref.dtype)
        # TODO(synk): on v7x (VALU-bound) replace arctan2 with
        # arctan(gx * pl.reciprocal(gy, approx=True)) + quadrant fixup.
        grad_ref[:, pl.ds(row0, nrows), :] = jnp.arctan2(gx, gy).astype(grad_ref.dtype)

    m = th - 8
    if m > 0:
        # Bulk rows: the whole 3-row stencil lives inside the main block.
        emit(xm_ref[:, pl.ds(0, m), :],
             xm_ref[:, pl.ds(1, m), :],
             xm_ref[:, pl.ds(2, m), :],
             0, m)

    # Last 8 output rows of the tile: the stencil straddles into the halo.
    seam_ref[:, pl.ds(0, 8), :] = xm_ref[:, pl.ds(m, 8), :]
    seam_ref[:, pl.ds(8, 8), :] = xh_ref[...]
    emit(seam_ref[:, pl.ds(0, 8), :],
         seam_ref[:, pl.ds(1, 8), :],
         seam_ref[:, pl.ds(2, 8), :],
         m, 8)


def sobel_filter(x, *, max_rows=512):
    """x: (N, 1, H, W) NCHW. Returns (g_x, g_y, g, g_grad), each
    (N, 1, H-2, W-2), matching F.conv2d with the module's 3x3 kernels."""
    n, c, h, w = x.shape
    assert c == 1, "SobelFilter weights are (1,1,3,3) -> requires 1 input channel"
    assert h >= 3 and w >= 3
    ho, wo = h - 2, w - 2
    itemsize = x.dtype.itemsize

    # --- per-generation VMEM budget --------------------------------------
    try:
        vmem_cap = int(pltpu.get_tpu_info().vmem_capacity_bytes)
    except Exception:
        vmem_cap = 64 << 20                      # conservative (v7x physical)
    budget = min((vmem_cap * 3) // 8, 48 << 20)  # ~24 MiB v7x, ~48 MiB v5e/v6e
    vmem_limit = int(min((vmem_cap * 3) // 4, 100 << 20))

    # Estimated per-output-row VMEM cost at bn=1: double-buffered input tile,
    # 4 double-buffered outputs, and ~6 live f32 intermediates of width W.
    bytes_per_row = (2 * w + 8 * wo) * itemsize + 6 * w * 4

    # --- H tiling (th multiple of 8) --------------------------------------
    th = min(_round_up(ho, 8),
             _round_up(max(int(max_rows), 8), 8),
             max(8, (budget // bytes_per_row) // 8 * 8))
    nt = pl.cdiv(ho, th)

    # --- batch grouping: largest divisor of n within the budget, keeping
    #     >= 2 grid steps whenever possible (both v7x TensorCores busy) -----
    min_steps = 2 if n * nt >= 2 else 1
    bn = 1
    for d in sorted((d for d in range(1, n + 1) if n % d == 0), reverse=True):
        if d * th * bytes_per_row <= budget and (n // d) * nt >= min_steps:
            bn = d
            break
    nb = n // bn

    xs = x.reshape(n, h, w)      # drop the unit channel dim (free reshape)

    hb = th // 8                 # halo block-index stride (8-row blocks)
    hmax = (h - 1) // 8          # last valid 8-row block of the input

    in_specs = [
        # Main tile of the input.
        pl.BlockSpec((bn, th, w), lambda b, t: (b, t, 0)),
        # 8-row halo: first rows of the next tile, clamped at the bottom.
        pl.BlockSpec((bn, 8, w),
                     lambda b, t: (b, jnp.minimum((t + 1) * hb, hmax), 0)),
    ]
    out_specs = tuple(pl.BlockSpec((bn, th, wo), lambda b, t: (b, t, 0))
                      for _ in range(4))
    out_shape = tuple(jax.ShapeDtypeStruct((n, ho, wo), x.dtype) for _ in range(4))

    outs = pl.pallas_call(
        _sobel_kernel,
        grid=(nb, nt),
        in_specs=in_specs,
        out_specs=out_specs,
        out_shape=out_shape,
        scratch_shapes=[pltpu.VMEM((bn, 16, w), x.dtype)],
        compiler_params=pltpu.CompilerParams(
            dimension_semantics=("parallel", "parallel"),
            vmem_limit_bytes=vmem_limit,
        ),
    )(xs, xs)

    # Restore the NCHW unit-channel dim (free reshape, no crop needed).
    return tuple(o.reshape(n, 1, ho, wo) for o in outs)


def _sobel_reference(x):
    """Pure-JAX reference (mirrors F.conv2d semantics) for validation."""
    kx = jnp.array(_SOBEL_X, jnp.float32).reshape(1, 1, 3, 3)
    ky = jnp.array(_SOBEL_Y, jnp.float32).reshape(1, 1, 3, 3)
    dn = jax.lax.conv_dimension_numbers(x.shape, kx.shape, ("NCHW", "OIHW", "NCHW"))
    xf = x.astype(jnp.float32)
    gx = jax.lax.conv_general_dilated(xf, kx, (1, 1), "VALID", dimension_numbers=dn)
    gy = jax.lax.conv_general_dilated(xf, ky, (1, 1), "VALID", dimension_numbers=dn)
    g = gx ** 2 + gy ** 2
    g_grad = jnp.arctan2(gx, gy)
    return gx, gy, g, g_grad


if __name__ == "__main__":
    names = ("g_x", "g_y", "g", "g_grad")
    key = jax.random.PRNGKey(0)
    k1, k2 = jax.random.split(key)

    # Small module-consistent shape.
    x = jax.random.normal(k1, (2, 1, 16, 16), dtype=jnp.float32)
    outs = jax.block_until_ready(sobel_filter(x))
    refs = _sobel_reference(x)
    for name, o, r in zip(names, outs, refs):
        assert o.shape == r.shape, (name, o.shape, r.shape)
        assert jnp.allclose(o, r, atol=1e-3, rtol=1e-3), name

    # Exercise multi-tile H (halo seams), partial edge blocks, batch grouping.
    x2 = jax.random.normal(k2, (2, 1, 40, 70), dtype=jnp.float32)
    outs2 = jax.block_until_ready(sobel_filter(x2, max_rows=16))
    refs2 = _sobel_reference(x2)
    for name, o, r in zip(names, outs2, refs2):
        assert o.shape == r.shape, (name, o.shape, r.shape)
        assert jnp.allclose(o, r, atol=1e-3, rtol=1e-3), name

    print("KERNEL_OK")
</pallas_src>

<mosaic_0001>
module attributes {stable_mosaic.version = 11 : i64} {
  func.func @_sobel_kernel(%arg0: i32, %arg1: i32, %arg2: memref<1x16x16xf32, #tpu.memory_space<vmem>>, %arg3: memref<1x8x16xf32, #tpu.memory_space<vmem>>, %arg4: memref<1x16x14xf32, #tpu.memory_space<vmem>>, %arg5: memref<1x16x14xf32, #tpu.memory_space<vmem>>, %arg6: memref<1x16x14xf32, #tpu.memory_space<vmem>>, %arg7: memref<1x16x14xf32, #tpu.memory_space<vmem>>, %arg8: memref<1x16x16xf32, #tpu.memory_space<vmem>>) attributes {dimension_semantics = [#tpu.dimension_semantics<parallel>, #tpu.dimension_semantics<parallel>], iteration_bounds = array<i64: 2, 1>, scalar_prefetch = 0 : i64, scratch_operands = 1 : i64, tpu.core_type = #tpu.core_type<tc>, window_params = [{transform_indices = @transform_0, window_bounds = array<i64: 1, 16, 16>}, {transform_indices = @transform_1, window_bounds = array<i64: 1, 8, 16>}, {transform_indices = @transform_2, window_bounds = array<i64: 1, 16, 14>}, {transform_indices = @transform_3, window_bounds = array<i64: 1, 16, 14>}, {transform_indices = @transform_4, window_bounds = array<i64: 1, 16, 14>}, {transform_indices = @transform_5, window_bounds = array<i64: 1, 16, 14>}]} {
    %c0 = arith.constant 0 : index
    %c0_0 = arith.constant 0 : index
    %c0_1 = arith.constant 0 : index
    %0 = vector.load %arg2[%c0, %c0_0, %c0_1] : memref<1x16x16xf32, #tpu.memory_space<vmem>>, vector<1x8x16xf32>
    %c0_2 = arith.constant 0 : index
    %c1 = arith.constant 1 : index
    %c0_3 = arith.constant 0 : index
    %1 = vector.load %arg2[%c0_2, %c1, %c0_3] : memref<1x16x16xf32, #tpu.memory_space<vmem>>, vector<1x8x16xf32>
    %c0_4 = arith.constant 0 : index
    %c2 = arith.constant 2 : index
    %c0_5 = arith.constant 0 : index
    %2 = vector.load %arg2[%c0_4, %c2, %c0_5] : memref<1x16x16xf32, #tpu.memory_space<vmem>>, vector<1x8x16xf32>
    %3 = arith.addf %0, %2 : vector<1x8x16xf32>
    %cst = arith.constant 2.000000e+00 : f32
    %4 = vector.broadcast %cst : f32 to vector<1x8x16xf32>
    %5 = arith.mulf %4, %1 : vector<1x8x16xf32>
    %6 = arith.addf %3, %5 : vector<1x8x16xf32>
    %7 = arith.subf %0, %2 : vector<1x8x16xf32>
    %8 = vector.extract_strided_slice %6 {offsets = [0, 0, 0], sizes = [1, 8, 14], strides = [1, 1, 1]} : vector<1x8x16xf32> to vector<1x8x14xf32>
    %9 = vector.extract_strided_slice %6 {offsets = [0, 0, 2], sizes = [1, 8, 14], strides = [1, 1, 1]} : vector<1x8x16xf32> to vector<1x8x14xf32>
    %10 = arith.subf %8, %9 : vector<1x8x14xf32>
    %c0_6 = arith.constant 0 : index
    %c0_7 = arith.constant 0 : index
    %c0_8 = arith.constant 0 : index
    %11 = vector.load %arg4[%c0_6, %c0_7, %c0_8] : memref<1x16x14xf32, #tpu.memory_space<vmem>>, vector<1x8x14xf32>
    tpu.vector_store %arg4[%c0_6, %c0_7, %c0_8], %10 {strides = array<i32>} : memref<1x16x14xf32, #tpu.memory_space<vmem>>, vector<1x8x14xf32>,
    %12 = vector.extract_strided_slice %7 {offsets = [0, 0, 0], sizes = [1, 8, 14], strides = [1, 1, 1]} : vector<1x8x16xf32> to vector<1x8x14xf32>
    %13 = vector.extract_strided_slice %7 {offsets = [0, 0, 2], sizes = [1, 8, 14], strides = [1, 1, 1]} : vector<1x8x16xf32> to vector<1x8x14xf32>
    %14 = arith.addf %12, %13 : vector<1x8x14xf32>
    %15 = vector.extract_strided_slice %3 {offsets = [0, 0, 1], sizes = [1, 8, 14], strides = [1, 1, 1]} : vector<1x8x16xf32> to vector<1x8x14xf32>
    %cst_9 = arith.constant 2.000000e+00 : f32
    %16 = vector.broadcast %cst_9 : f32 to vector<1x8x14xf32>
    %17 = arith.mulf %16, %15 : vector<1x8x14xf32>
    %18 = arith.addf %14, %17 : vector<1x8x14xf32>
    %c0_10 = arith.constant 0 : index
    %c0_11 = arith.constant 0 : index
    %c0_12 = arith.constant 0 : index
    %19 = vector.load %arg5[%c0_10, %c0_11, %c0_12] : memref<1x16x14xf32, #tpu.memory_space<vmem>>, vector<1x8x14xf32>
    tpu.vector_store %arg5[%c0_10, %c0_11, %c0_12], %18 {strides = array<i32>} : memref<1x16x14xf32, #tpu.memory_space<vmem>>, vector<1x8x14xf32>,
    %20 = arith.mulf %10, %10 : vector<1x8x14xf32>
    %21 = arith.mulf %18, %18 : vector<1x8x14xf32>
    %22 = arith.addf %20, %21 : vector<1x8x14xf32>
    %c0_13 = arith.constant 0 : index
    %c0_14 = arith.constant 0 : index
    %c0_15 = arith.constant 0 : index
    %23 = vector.load %arg6[%c0_13, %c0_14, %c0_15] : memref<1x16x14xf32, #tpu.memory_space<vmem>>, vector<1x8x14xf32>
    tpu.vector_store %arg6[%c0_13, %c0_14, %c0_15], %22 {strides = array<i32>} : memref<1x16x14xf32, #tpu.memory_space<vmem>>, vector<1x8x14xf32>,
    %24 = math.atan2 %10, %18 : vector<1x8x14xf32>
    %c0_16 = arith.constant 0 : index
    %c0_17 = arith.constant 0 : index
    %c0_18 = arith.constant 0 : index
    %25 = vector.load %arg7[%c0_16, %c0_17, %c0_18] : memref<1x16x14xf32, #tpu.memory_space<vmem>>, vector<1x8x14xf32>
    tpu.vector_store %arg7[%c0_16, %c0_17, %c0_18], %24 {strides = array<i32>} : memref<1x16x14xf32, #tpu.memory_space<vmem>>, vector<1x8x14xf32>,
    %c0_19 = arith.constant 0 : index
    %c8 = arith.constant 8 : index
    %c0_20 = arith.constant 0 : index
    %26 = vector.load %arg2[%c0_19, %c8, %c0_20] : memref<1x16x16xf32, #tpu.memory_space<vmem>>, vector<1x8x16xf32>
    %c0_21 = arith.constant 0 : index
    %c0_22 = arith.constant 0 : index
    %c0_23 = arith.constant 0 : index
    %27 = vector.load %arg8[%c0_21, %c0_22, %c0_23] : memref<1x16x16xf32, #tpu.memory_space<vmem>>, vector<1x8x16xf32>
    tpu.vector_store %arg8[%c0_21, %c0_22, %c0_23], %26 {strides = array<i32>} : memref<1x16x16xf32, #tpu.memory_space<vmem>>, vector<1x8x16xf32>,
    %c0_24 = arith.constant 0 : index
    %c0_25 = arith.constant 0 : index
    %c0_26 = arith.constant 0 : index
    %28 = vector.load %arg3[%c0_24, %c0_25, %c0_26] : memref<1x8x16xf32, #tpu.memory_space<vmem>>, vector<1x8x16xf32>
    %c0_27 = arith.constant 0 : index
    %c8_28 = arith.constant 8 : index
    %c0_29 = arith.constant 0 : index
    %29 = vector.load %arg8[%c0_27, %c8_28, %c0_29] : memref<1x16x16xf32, #tpu.memory_space<vmem>>, vector<1x8x16xf32>
    tpu.vector_store %arg8[%c0_27, %c8_28, %c0_29], %28 {strides = array<i32>} : memref<1x16x16xf32, #tpu.memory_space<vmem>>, vector<1x8x16xf32>,
    %c0_30 = arith.constant 0 : index
    %c0_31 = arith.constant 0 : index
    %c0_32 = arith.constant 0 : index
    %30 = vector.load %arg8[%c0_30, %c0_31, %c0_32] : memref<1x16x16xf32, #tpu.memory_space<vmem>>, vector<1x8x16xf32>
    %c0_33 = arith.constant 0 : index
    %c1_34 = arith.constant 1 : index
    %c0_35 = arith.constant 0 : index
    %31 = vector.load %arg8[%c0_33, %c1_34, %c0_35] : memref<1x16x16xf32, #tpu.memory_space<vmem>>, vector<1x8x16xf32>
    %c0_36 = arith.constant 0 : index
    %c2_37 = arith.constant 2 : index
    %c0_38 = arith.constant 0 : index
    %32 = vector.load %arg8[%c0_36, %c2_37, %c0_38] : memref<1x16x16xf32, #tpu.memory_space<vmem>>, vector<1x8x16xf32>
    %33 = arith.addf %30, %32 : vector<1x8x16xf32>
    %cst_39 = arith.constant 2.000000e+00 : f32
    %34 = vector.broadcast %cst_39 : f32 to vector<1x8x16xf32>
    %35 = arith.mulf %34, %31 : vector<1x8x16xf32>
    %36 = arith.addf %33, %35 : vector<1x8x16xf32>
    %37 = arith.subf %30, %32 : vector<1x8x16xf32>
    %38 = vector.extract_strided_slice %36 {offsets = [0, 0, 0], sizes = [1, 8, 14], strides = [1, 1, 1]} : vector<1x8x16xf32> to vector<1x8x14xf32>
    %39 = vector.extract_strided_slice %36 {offsets = [0, 0, 2], sizes = [1, 8, 14], strides = [1, 1, 1]} : vector<1x8x16xf32> to vector<1x8x14xf32>
    %40 = arith.subf %38, %39 : vector<1x8x14xf32>
    %c0_40 = arith.constant 0 : index
    %c8_41 = arith.constant 8 : index
    %c0_42 = arith.constant 0 : index
    %41 = vector.load %arg4[%c0_40, %c8_41, %c0_42] : memref<1x16x14xf32, #tpu.memory_space<vmem>>, vector<1x8x14xf32>
    tpu.vector_store %arg4[%c0_40, %c8_41, %c0_42], %40 {strides = array<i32>} : memref<1x16x14xf32, #tpu.memory_space<vmem>>, vector<1x8x14xf32>,
    %42 = vector.extract_strided_slice %37 {offsets = [0, 0, 0], sizes = [1, 8, 14], strides = [1, 1, 1]} : vector<1x8x16xf32> to vector<1x8x14xf32>
    %43 = vector.extract_strided_slice %37 {offsets = [0, 0, 2], sizes = [1, 8, 14], strides = [1, 1, 1]} : vector<1x8x16xf32> to vector<1x8x14xf32>
    %44 = arith.addf %42, %43 : vector<1x8x14xf32>
    %45 = vector.extract_strided_slice %33 {offsets = [0, 0, 1], sizes = [1, 8, 14], strides = [1, 1, 1]} : vector<1x8x16xf32> to vector<1x8x14xf32>
    %cst_43 = arith.constant 2.000000e+00 : f32
    %46 = vector.broadcast %cst_43 : f32 to vector<1x8x14xf32>
    %47 = arith.mulf %46, %45 : vector<1x8x14xf32>
    %48 = arith.addf %44, %47 : vector<1x8x14xf32>
    %c0_44 = arith.constant 0 : index
    %c8_45 = arith.constant 8 : index
    %c0_46 = arith.constant 0 : index
    %49 = vector.load %arg5[%c0_44, %c8_45, %c0_46] : memref<1x16x14xf32, #tpu.memory_space<vmem>>, vector<1x8x14xf32>
    tpu.vector_store %arg5[%c0_44, %c8_45, %c0_46], %48 {strides = array<i32>} : memref<1x16x14xf32, #tpu.memory_space<vmem>>, vector<1x8x14xf32>,
    %50 = arith.mulf %40, %40 : vector<1x8x14xf32>
    %51 = arith.mulf %48, %48 : vector<1x8x14xf32>
    %52 = arith.addf %50, %51 : vector<1x8x14xf32>
    %c0_47 = arith.constant 0 : index
    %c8_48 = arith.constant 8 : index
    %c0_49 = arith.constant 0 : index
    %53 = vector.load %arg6[%c0_47, %c8_48, %c0_49] : memref<1x16x14xf32, #tpu.memory_space<vmem>>, vector<1x8x14xf32>
    tpu.vector_store %arg6[%c0_47, %c8_48, %c0_49], %52 {strides = array<i32>} : memref<1x16x14xf32, #tpu.memory_space<vmem>>, vector<1x8x14xf32>,
    %54 = math.atan2 %40, %48 : vector<1x8x14xf32>
    %c0_50 = arith.constant 0 : index
    %c8_51 = arith.constant 8 : index
    %c0_52 = arith.constant 0 : index
    %55 = vector.load %arg7[%c0_50, %c8_51, %c0_52] : memref<1x16x14xf32, #tpu.memory_space<vmem>>, vector<1x8x14xf32>
    tpu.vector_store %arg7[%c0_50, %c8_51, %c0_52], %54 {strides = array<i32>} : memref<1x16x14xf32, #tpu.memory_space<vmem>>, vector<1x8x14xf32>,
    return
  }
  func.func @transform_0(%arg0: i32, %arg1: i32) -> (i32, i32, i32) {
    %c0_i32 = arith.constant 0 : i32
    %c0_i32_0 = arith.constant 0 : i32
    return %arg0, %arg1, %c0_i32 : i32, i32, i32
  }
  func.func @transform_1(%arg0: i32, %arg1: i32) -> (i32, i32, i32) {
    %c1_i32 = arith.constant 1 : i32
    %0 = arith.addi %arg1, %c1_i32 : i32
    %c2_i32 = arith.constant 2 : i32
    %1 = arith.muli %0, %c2_i32 : i32
    %c1_i32_0 = arith.constant 1 : i32
    %2 = arith.minsi %1, %c1_i32_0 : i32
    %c0_i32 = arith.constant 0 : i32
    %c0_i32_1 = arith.constant 0 : i32
    return %arg0, %2, %c0_i32 : i32, i32, i32
  }
  func.func @transform_2(%arg0: i32, %arg1: i32) -> (i32, i32, i32) {
    %c0_i32 = arith.constant 0 : i32
    %c0_i32_0 = arith.constant 0 : i32
    return %arg0, %arg1, %c0_i32 : i32, i32, i32
  }
  func.func @transform_3(%arg0: i32, %arg1: i32) -> (i32, i32, i32) {
    %c0_i32 = arith.constant 0 : i32
    %c0_i32_0 = arith.constant 0 : i32
    return %arg0, %arg1, %c0_i32 : i32, i32, i32
  }
  func.func @transform_4(%arg0: i32, %arg1: i32) -> (i32, i32, i32) {
    %c0_i32 = arith.constant 0 : i32
    %c0_i32_0 = arith.constant 0 : i32
    return %arg0, %arg1, %c0_i32 : i32, i32, i32
  }
  func.func @transform_5(%arg0: i32, %arg1: i32) -> (i32, i32, i32) {
    %c0_i32 = arith.constant 0 : i32
    %c0_i32_0 = arith.constant 0 : i32
    return %arg0, %arg1, %c0_i32 : i32, i32, i32
  }
}

</mosaic_0001>

<bundles_post_ra>
// kernel: tpu_custom_call.1
= control target key start
LH: loop header
LB: loop body
LE: loop exit
PB: predicated region body
PF: predicated region fallthrough
CT: control target
= control target key end

     0   :  { %11 = vsyncpa [#allocation4], 0  ;;  %s1339_s0 = inlined_call_operand.hbm [shape: f32[2,16,16], index: 0, kind: input, shape index: {}]   ;;  %s1340_s1 = inlined_call_operand.hbm [shape: f32[2,16,16], index: 1, kind: input, shape index: {}]   ;;  %s1341_s2 = inlined_call_operand.vmem [shape: f32[2,14,14], index: 2, kind: output, shape index: {0}]   ;;  %s1342_s3 = inlined_call_operand.vmem [shape: f32[2,14,14], index: 3, kind: output, shape index: {1}]   ;;  %s1343_s4 = inlined_call_operand.vmem [shape: f32[2,14,14], index: 4, kind: output, shape index: {2}]   ;;  %s1344_s5 = inlined_call_operand.vmem [shape: f32[2,14,14], index: 5, kind: output, shape index: {3}]  }
   0x1   :  { %13 = vsyncpa [#allocation4 + $0x1], 0 }
   0x2   :  { %14 = vsyncpa [#allocation6], 0 }
   0x3   :  { %16 = vsyncpa [#allocation6 + $0x1], 0  ;;  %s1085_s18 = smov 0   ;;  %s1087_s19 = smov 0  }
   0x4   :  { %s1089_s20 = smov 0   ;;  %s1091_s21 = smov 0  }
   0x5   :  { %s1093_s22 = smov 0   ;;  %s1095_s23 = smov 0  }
   0x6 LB: > { %s830_s24 = sadd.s32 4294967295, %s1045_s23   ;;  %s34_s25 = sadd.s32 1, %s1041_s22  ;;  %s1045_s23 = sphi %s1095_s23, %s22_s23   ;;  %s1041_s22 = sphi %s1093_s22, %s1356_s22   ;;  %s1037_s21 = sphi %s1091_s21, %s1355_s21   ;;  %s1033_s20 = sphi %s1089_s20, %s1354_s20   ;;  %s1029_s19 = sphi %s1087_s19, %s1353_s19   ;;  %s1025_s18 = sphi %s1085_s18, %s1352_s18  }
   0x7   : > { %p36_p0 = scmp.ge.s32.totalorder %s34_s25, 2  ;;  %s43_s26 = sadd.s32 1, %s1033_s20 }
   0x8   : > { %p50_p1 = scmp.ne.s32.totalorder %s1033_s20, %s1029_s19  ;;  %p51_p2 = scmp.eq.s32.totalorder %s1045_s23, 0 }
   0x9   : > { %s1358_s25 = smov (%p36_p0, %s34_s25), 0  ;;  %p56_p4 = scmp.ne.s32.totalorder %s1029_s19, %s1025_s18 }
   0xa   : > { %p1121_p3 = por %p51_p2, %p50_p1  ;;  %s38_s28 = ssub.s32 %s1041_s22, %s1358_s25 }
   0xb   : > { %p57_p5 = scmp.eq.s32.totalorder %s830_s24, 0  ;;  %p41_p6 = scmp.eq.s32.totalorder %s38_s28, 0 }
   0xc   : > { %p872_p8 = scmp.lt.s32.totalorder %s1045_s23, 2  ;;  %s1137_s6 = sand.u32 1, %s1033_s20  }
   0xd   : > { %p1128_p7 = por %p57_p5, %p56_p4  ;;  %s853_s7 = sshll.u32 %s1041_s22, 8 }
   0xe   : > { %s1134_s30 = scalar_select %p41_p6, %s1033_s20, %s43_s26  }
   0xf   : > { %s1347_s29 = scalar_select %p1128_p7, 1, 0 }
  0x10   : > { %s834_s8 = sshll.u32 %s1137_s6, 4  ;;  %s1146_s11 = scalar_lea.hbm %s1339_s0, %s853_s7 }
  0x11   : > { %s232_s12 = scalar_lea.vmem [#allocation3], %s834_s8  ;;  %p1150_p9 = pnand %p872_p8, %p1121_p3 }
  0x12   : > { %s241_s13 = sshll.u32 %s232_s12, 4  ;;  %s229_s15 = scalar_lea.sflag [#allocation4], %s1137_s6  ;;  %s1154_s13 = int_to_ptr.vmem [resolvable:$true] %s241_s13 }
  0x13   : > { %s931_s16 = scalar_lea.hbm %s1146_s11, 256  ;;  %p933_p11 = pneg %p1150_p9 }
  0x14   : > { %p932_p10 = scmp.ne.s32.totalorder %s1146_s11, %s931_s16  ;;  %s936_s24 = scalar_lea.hbm %s1339_s0, 512 }
  0x15   : > { %p937_p0 = scmp.lt.u32.totalorder %s1146_s11, %s1339_s0  ;;  %p938_p1 = scmp.lt.u32.totalorder %s936_s24, %s931_s16 }
  0x16   : > { %p934_p12 = pnand %p933_p11, %p932_p10  ;;  %p940_p3 = scmp.lt.u32.totalorder %s931_s16, %s1146_s11 }
  0x17   : > { %p939_p2 = por %p938_p1, %p937_p0 }
  0x18   : > { %p935_p13 = pneg %p934_p12 }
  0x19   : > { %p941_p4 = por %p940_p3, %p939_p2 }
  0x1b   : > { %p942_p5 = pnand %p941_p4, %p935_p13 }
  0x1d   : > { %945 = shalt.err (!%p942_p5)
}
  0x1e   : > { %s946_s28 = scalar_lea.vmem %s1154_s13, 256  ;;  %s1047_s8 = smov [#allocation3]  }
  0x1f   : > { %p947_p6 = scmp.ne.s32.totalorder %s1154_s13, %s946_s28  ;;  %s951_s9 = sshll.u32 %s1047_s8, 4  ;;  %s952_s9 = int_to_ptr.vmem [resolvable:$false] %s951_s9 }
  0x20   : > { %s953_s10 = scalar_lea.vmem %s952_s9, 512  ;;  %p954_p12 = scmp.lt.s32.totalorder %s1154_s13, %s952_s9 }
  0x21   : > { %p949_p8 = pnand %p947_p6, %p933_p11  ;;  %p955_p0 = scmp.lt.s32.totalorder %s953_s10, %s946_s28 }
  0x23   : > { %p950_p10 = pneg %p949_p8  ;;  %p956_p1 = por %p955_p0, %p954_p12 }
  0x25   : > { %p957_p2 = pnand %p956_p1, %p950_p10 }
  0x27   : > { %960 = shalt.err (!%p957_p2)
}
  0x28   : > { %s1048_s12 = smov 128   ;;  %s1049_s16 = smov 8  }
  0x29   : > { %868 = dma.hbm_to_vmem [thread:$0]  (!%p1150_p9), %s1146_s11, 256, %s1154_s13, %s229_s15, %s1048_s12, %s1048_s12, %s1049_s16  }
  0x2a   : > { %p840_p13 = scmp.ge.s32.totalorder %s1045_s23, 1  ;;  %p273_p3 = scmp.lt.s32.totalorder %s1045_s23, 3 }
  0x2b   : > { %s837_s17 = sshll.u32 %s1137_s6, 3  ;;  %s855_s24 = sadd.s32 128, %s853_s7 }
  0x2c   : > { %p1187_p4 = pnand %p840_p13, %p273_p3  ;;  %s255_s26 = scalar_lea.vmem [#allocation5], %s837_s17 }
  0x2d   : > { %s268_s27 = sshll.u32 %s255_s26, 4  ;;  %s1196_s9 = scalar_lea.hbm %s1340_s1, %s855_s24  ;;  %s269_s27 = int_to_ptr.vmem [resolvable:$true] %s268_s27 }
  0x2e   : > { %s1349_s18 = scalar_select %p1187_p4, 1, 0 }
  0x2f   : > { %s252_s11 = scalar_lea.sflag [#allocation6], %s1137_s6  ;;  %s961_s13 = scalar_lea.hbm %s1196_s9, 128 }
  0x30   : > { %p962_p5 = scmp.ne.s32.totalorder %s1196_s9, %s961_s13  ;;  %s966_s10 = scalar_lea.hbm %s1340_s1, 512 }
  0x31   : > { %p967_p10 = scmp.lt.u32.totalorder %s1196_s9, %s1340_s1  ;;  %p968_p12 = scmp.lt.u32.totalorder %s966_s10, %s961_s13 }
  0x32   : > { %p964_p6 = pnand %p962_p5, %p933_p11  ;;  %p970_p1 = scmp.lt.u32.totalorder %s961_s13, %s1196_s9 }
  0x33   : > { %p969_p0 = por %p968_p12, %p967_p10 }
  0x34   : > { %p965_p8 = pneg %p964_p6 }
  0x35   : > { %p971_p2 = por %p970_p1, %p969_p0 }
  0x37   : > { %p972_p13 = pnand %p971_p2, %p965_p8 }
  0x39   : > { %975 = shalt.err (!%p972_p13)
}
  0x3a   : > { %s976_s6 = scalar_lea.vmem %s269_s27, 128  ;;  %s1050_s17 = smov [#allocation5]  }
  0x3b   : > { %p977_p3 = scmp.ne.s32.totalorder %s269_s27, %s976_s6  ;;  %s981_s24 = sshll.u32 %s1050_s17, 4  ;;  %s982_s24 = int_to_ptr.vmem [resolvable:$false] %s981_s24 }
  0x3c   : > { %s983_s26 = scalar_lea.vmem %s982_s24, 256  ;;  %p984_p7 = scmp.lt.s32.totalorder %s269_s27, %s982_s24 }
  0x3d   : > { %p979_p5 = pnand %p977_p3, %p933_p11  ;;  %p985_p4 = scmp.lt.s32.totalorder %s983_s26, %s976_s6 }
  0x3f   : > { %p980_p6 = pneg %p979_p5  ;;  %p986_p10 = por %p985_p4, %p984_p7 }
  0x41   : > { %p987_p12 = pnand %p986_p10, %p980_p6 }
  0x43   : > { %990 = shalt.err (!%p987_p12)
}
  0x44   : > { %871 = dma.hbm_to_vmem [thread:$0]  (!%p1150_p9), %s1196_s9, 128, %s269_s27, %s252_s11  }
  0x45   : > { %p1350_p8 = scmp.ne.s32.totalorder %s1349_s18, 0 }
  0x46   : > { %s279_s28 = sand.u32 (!%p1350_p8), 1, %s1029_s19   ;;  %p1351_p11 = scmp.ne.s32.totalorder (!%p1350_p8), %s1347_s29, 0 }
  0x47   : > { %277 = sbr.rel (%p1350_p8) target bundleno = 284 (0x11c), region = 28  ;;  %s841_s8 = sshll.u32 (!%p1350_p8), %s279_s28, 4 }
  0x48   : > { %s280_s13 = scalar_lea.sflag (!%p1350_p8), [#allocation4], %s279_s28  ;;  %s283_s7 = scalar_lea.vmem (!%p1350_p8), [#allocation3], %s841_s8 }
  0x4e   : > { %1016 = dma.done.wait (%p1351_p11), %s280_s13, 256  }
  0x4f   : > { %1018 = vsyncadd (%p1351_p11), %s280_s13, 4294967040  ;;  %s842_s15 = sshll.u32 %s279_s28, 3  ;;  %s289_s10 = scalar_lea.sflag [#allocation6], %s279_s28 }
  0x50   : > { %s292_s14 = scalar_lea.vmem [#allocation5], %s842_s15 }
  0x51   : > { %1020 = dma.done.wait (%p1351_p11), %s289_s10, 128  }
  0x52   : > { %1022 = vsyncadd (%p1351_p11), %s289_s10, 4294967168  ;;  %vm479_vm0 = vcmask 130048   ;;  %v400_v0 = vld [vmem:[%s283_s7] sm:$0xff]  ;;  %v478_v6 = vld [vmem:[%s283_s7 + $0x8] sm:$0xff]  ;;  %s1051_s18 = smov 126   ;;  %s1052_s29 = smov 127  }
  0x53   : > { %v401_v1 = vld [vmem:[%s283_s7 + $0x1] sm:$0xff]  ;;  %480 = vst.msk [vmem:[#allocation2] sm:$0xff] %vm479_vm0, %v478_v6  ;;  %p361_p7 = scmp.lt.s32.totalorder %s1037_s21, 1  ;;  %vm412_vm1 = vcmask 113664  }
  0x54   : > { %v402_v2 = vld [vmem:[%s283_s7 + $0x2] sm:$0xff]  ;;  %v404_v4 = vmul.f32 2.0, %v401_v1 }
  0x55   : > { %v403_v3 = vadd.f32 %v402_v2, %v400_v0  ;;  %v406_v5 = vsub.f32 %v400_v0, %v402_v2  ;;  %v481_v7 = vld [vmem:[%s292_s14] sm:$0xff]  ;;  %s1360_s21 = smov (!%p361_p7, %s1037_s21), 1 }
  0x56   : > { %482 = vst.msk [vmem:[#allocation2 + $0x8] sm:$0xff] %vm479_vm0, %v481_v7  ;;  %s1231_s27 = sshll.u32 %s1360_s21, 4 }
  0x57   : > { %v405_v8 = vadd.f32 %v404_v4, %v403_v3  ;;  %415 = vrot.lane.b32.xlu0 %v406_v5, %s1051_s18  ;;  %v419_v9 = vmul.f32 2.0, %v403_v3  ;;  %s368_s12 = scalar_lea.vmem %s1341_s2, %s1231_s27  ;;  %s378_s21 = scalar_lea.vmem %s1342_s3, %s1231_s27 }
  0x58   : > { %s388_s26 = scalar_lea.vmem %s1343_s4, %s1231_s27  ;;  %s398_s13 = scalar_lea.vmem %s1344_s5, %s1231_s27 }
  0x59   : > { %408 = vrot.lane.b32.xlu1 %v405_v8, %s1051_s18 }
  0x5a   : > { %v483_v10 = vld [vmem:[#allocation2] sm:$0xff] }
  0x5d   : > { %421 = vrot.lane.b32.xlu1 %v419_v9, %s1052_s29  ;;  %v485_v11 = vld [vmem:[#allocation2 + $0x2] sm:$0xff] }
  0x5e   : > { %v484_v12 = vld [vmem:[#allocation2 + $0x1] sm:$0xff]  ;;  %v489_v13 = vsub.f32 %v483_v10, %v485_v11  ;;  %v486_v14 = vadd.f32 %v485_v11, %v483_v10 }
  0x5f   : > { %v487_v15 = vmul.f32 2.0, %v484_v12 }
  0x60   : > { %497 = vrot.lane.b32.xlu0 %v489_v13, %s1051_s18  ;;  %v501_v16 = vmul.f32 2.0, %v486_v14 }
  0x61   : > { %v488_v17 = vadd.f32 %v487_v15, %v486_v14 }
  0x62   : > { %503 = vrot.lane.b32.xlu1 %v501_v16, %s1052_s29 }
  0x64   : > { %491 = vrot.lane.b32.xlu0 %v488_v17, %s1051_s18 }
  0xc9   : > { %v416_v18 = vpop.permute.xlu0 %415 }
  0xca   : > { %v418_v21 = vadd.f32 %v416_v18, %v406_v5 }
  0xcb   : > { %v409_v19 = vpop.permute.xlu1 %408 }
  0xcc   : > { %v1237_v20 = vsub.f32 %v405_v8, %v409_v19 }
  0xce   : > { %413 = vst.msk [vmem:[%s368_s12] sm:$0xff] %vm412_vm1, %v1237_v20  ;;  %v426_v24 = vmul.f32 %v1237_v20, %v1237_v20  ;;  %v1250_v25 = vand.u32 2147483647, %v1237_v20  ;;  %vm462_vm7 = vcmp.eq.f32.partialorder %v1237_v20, 0.0  ;;  %vm465_vm8 = vcmp.ne.f32.partialorder %v1237_v20, %v1237_v20 }
  0xcf   : > { %v422_v22 = vpop.permute.xlu1 %421 }
  0xd0   : > { %v1245_v23 = vadd.f32 %v422_v22, %v418_v21  ;;  %vm471_vm9 = vcmp.eq.s32.totalorder %v1250_v25, inf }
  0xd2   : > { %425 = vst.msk [vmem:[%s378_s21] sm:$0xff] %vm412_vm1, %v1245_v23  ;;  %v427_v26 = vmul.f32 %v1245_v23, %v1245_v23  ;;  %v1257_v27 = vand.u32 2147483647, %v1245_v23  ;;  %v498_v28 = vpop.permute.xlu0 %497  ;;  %vm460_vm3 = vcmp.lt.s32.totalorder %v1245_v23, 0  ;;  %vm464_vm4 = vcmp.ne.f32.partialorder %v1245_v23, %v1245_v23 }
  0xd3   : > { %v500_v29 = vadd.f32 %v498_v28, %v489_v13  ;;  %vm457_vm5 = vcmp.lt.f32.partialorder %v1245_v23, 0.0  ;;  %vm466_vm10 = vmor %vm464_vm4, %vm465_vm8 }
  0xd4   : > { %v428_v30 = vadd.f32 %v427_v26, %v426_v24  ;;  %v433_v31 = vmax.f32 %v1257_v27, %v1250_v25  ;;  %v504_v32 = vpop.permute.xlu1 %503  ;;  %v432_v42 = vmin.f32 %v1257_v27, %v1250_v25  ;;  %vm454_vm2 = vcmp.gt.f32.partialorder %v1250_v25, %v1257_v27 }
  0xd5   : > { %v1265_v33 = vadd.f32 %v504_v32, %v500_v29  ;;  %vm470_vm6 = vcmp.eq.s32.totalorder %v1257_v27, inf  ;;  %v1053_v26 = vmov 0.0   ;;  %v1054_v32 = vmov 0.7853982  }
  0xd6   : > { %429 = vst.msk [vmem:[%s388_s26] sm:$0xff] %vm412_vm1, %v428_v30  ;;  %927 = vrcp.f32 %v433_v31  ;;  %v492_v34 = vpop.permute.xlu0 %491  ;;  %v461_v28 = vsel %vm460_vm3, 3.1415927, %v1053_v26  ;;  %v469_v23 = vsel %vm457_vm5, 2.3561945, %v1054_v32  ;;  %vm472_vm11 = vmand %vm470_vm6, %vm471_vm9 }
  0xd7   : > { %507 = vst.msk [vmem:[%s378_s21 + $0x8] sm:$0xff] %vm412_vm1, %v1265_v33  ;;  %v1270_v35 = vsub.f32 %v488_v17, %v492_v34  ;;  %v509_v36 = vmul.f32 %v1265_v33, %v1265_v33  ;;  %v1275_v37 = vand.u32 2147483647, %v1265_v33  ;;  %vm542_vm13 = vcmp.lt.s32.totalorder %v1265_v33, 0 }
  0xd8   : > { %vm539_vm15 = vcmp.lt.f32.partialorder %v1265_v33, 0.0 }
  0xd9   : > { %495 = vst.msk [vmem:[%s368_s12 + $0x8] sm:$0xff] %vm412_vm1, %v1270_v35  ;;  %v508_v38 = vmul.f32 %v1270_v35, %v1270_v35  ;;  %v1282_v39 = vand.u32 2147483647, %v1270_v35  ;;  %vm547_vm14 = vcmp.ne.f32.partialorder %v1270_v35, %v1270_v35  ;;  %vm544_vm3 = vcmp.eq.f32.partialorder %v1270_v35, 0.0 }
  0xdb   : > { %v510_v40 = vadd.f32 %v509_v36, %v508_v38  ;;  %v515_v41 = vmax.f32 %v1275_v37, %v1282_v39  ;;  %v514_v48 = vmin.f32 %v1275_v37, %v1282_v39  ;;  %v475_v36 = vand.u32 2147483648, %v1237_v20 }
  0xdc   : > { %vm536_vm12 = vcmp.gt.f32.partialorder %v1282_v39, %v1275_v37  ;;  %vm553_vm0 = vcmp.eq.s32.totalorder %v1282_v39, inf  ;;  %v543_v20 = vsel %vm542_vm13, 3.1415927, %v1053_v26  ;;  %v557_v39 = vand.u32 2147483648, %v1270_v35 }
  0xdd   : > { %511 = vst.msk [vmem:[%s388_s26 + $0x8] sm:$0xff] %vm412_vm1, %v510_v40  ;;  %929 = vrcp.f32 %v515_v41 }
  0xe0   : > { %v928_v43 = vpop.eup %927 }
  0xe1   : > { %v435_v44 = vmul.f32 %v928_v43, %v432_v42 }
  0xe3   : > { %v436_v45 = vmul.f32 %v435_v44, %v435_v44 }
  0xe5   : > { %v437_v46 = vmul.f32 0.002785687, %v436_v45 }
  0xe7   : > { %v438_v47 = vadd.f32 -0.015866, %v437_v46  ;;  %v930_v49 = vpop.eup %929 }
  0xe8   : > { %v517_v51 = vmul.f32 %v930_v49, %v514_v48 }
  0xe9   : > { %v439_v50 = vmul.f32 %v438_v47, %v436_v45 }
  0xea   : > { %v518_v53 = vmul.f32 %v517_v51, %v517_v51 }
  0xeb   : > { %v440_v52 = vadd.f32 0.04247222, %v439_v50 }
  0xec   : > { %v519_v55 = vmul.f32 0.002785687, %v518_v53 }
  0xed   : > { %v441_v54 = vmul.f32 %v440_v52, %v436_v45 }
  0xee   : > { %v520_v57 = vadd.f32 -0.015866, %v519_v55 }
  0xef   : > { %v442_v56 = vadd.f32 -0.074975304, %v441_v54 }
  0xf0   : > { %v521_v59 = vmul.f32 %v520_v57, %v518_v53 }
  0xf1   : > { %v443_v58 = vmul.f32 %v442_v56, %v436_v45 }
  0xf2   : > { %v522_v61 = vadd.f32 0.04247222, %v521_v59 }
  0xf3   : > { %v444_v60 = vadd.f32 0.1064488, %v443_v58 }
  0xf4   : > { %v523_v63 = vmul.f32 %v522_v61, %v518_v53 }
  0xf5   : > { %v445_v62 = vmul.f32 %v444_v60, %v436_v45 }
  0xf6   : > { %v524_v1 = vadd.f32 -0.074975304, %v523_v63 }
  0xf7   : > { %v446_v0 = vadd.f32 -0.14207031, %v445_v62 }
  0xf8   : > { %v525_v3 = vmul.f32 %v524_v1, %v518_v53 }
  0xf9   : > { %v447_v2 = vmul.f32 %v446_v0, %v436_v45 }
  0xfa   : > { %v526_v5 = vadd.f32 0.1064488, %v525_v3 }
  0xfb   : > { %v448_v4 = vadd.f32 0.19993454, %v447_v2 }
  0xfc   : > { %v527_v7 = vmul.f32 %v526_v5, %v518_v53 }
  0xfd   : > { %v449_v6 = vmul.f32 %v448_v4, %v436_v45 }
  0xfe   : > { %v528_v9 = vadd.f32 -0.14207031, %v527_v7 }
  0xff   : > { %v450_v8 = vadd.f32 -0.33333147, %v449_v6 }
 0x100   : > { %v529_v11 = vmul.f32 %v528_v9, %v518_v53 }
 0x101   : > { %v451_v10 = vmul.f32 %v450_v8, %v436_v45 }
 0x102   : > { %v530_v13 = vadd.f32 0.19993454, %v529_v11 }
 0x103   : > { %v452_v12 = vmul.f32 %v451_v10, %v435_v44 }
 0x104   : > { %v531_v15 = vmul.f32 %v530_v13, %v518_v53 }
 0x105   : > { %v453_v14 = vadd.f32 %v452_v12, %v435_v44  ;;  %v551_v44 = vsel %vm539_vm15, 2.3561945, %v1054_v32 }
 0x106   : > { %v532_v17 = vadd.f32 -0.33333147, %v531_v15 }
 0x107   : > { %v455_v16 = vsub.f32 1.5707964, %v453_v14 }
 0x108   : > { %v533_v19 = vmul.f32 %v532_v17, %v518_v53 }
 0x109   : > { %v456_v18 = vsel %vm454_vm2, %v455_v16, %v453_v14  ;;  %vm546_vm2 = vcmp.ne.f32.partialorder %v1265_v33, %v1265_v33 }
 0x10a   : > { %v458_v21 = vsub.f32 3.1415927, %v456_v18  ;;  %v534_v22 = vmul.f32 %v533_v19, %v517_v51  ;;  %vm548_vm4 = vmor %vm546_vm2, %vm547_vm14 }
 0x10c   : > { %v459_v24 = vsel %vm457_vm5, %v458_v21, %v456_v18  ;;  %v535_v30 = vadd.f32 %v534_v22, %v517_v51  ;;  %vm552_vm5 = vcmp.eq.s32.totalorder %v1275_v37, inf }
 0x10d   : > { %v463_v29 = vsel %vm462_vm7, %v461_v28, %v459_v24  ;;  %vm554_vm6 = vmand %vm552_vm5, %vm553_vm0 }
 0x10e   : > { %v467_v31 = vsel %vm466_vm10, nan, %v463_v29  ;;  %v537_v34 = vsub.f32 1.5707964, %v535_v30 }
 0x10f   : > { %v473_v27 = vsel %vm472_vm11, %v469_v23, %v467_v31 }
 0x110   : > { %v474_v38 = vand.u32 2147483647, %v473_v27  ;;  %v538_v25 = vsel %vm536_vm12, %v537_v34, %v535_v30 }
 0x111   : > { %v540_v41 = vsub.f32 3.1415927, %v538_v25 }
 0x112   : > { %v476_v40 = vor.u32 %v475_v36, %v474_v38 }
 0x113   : > { %v541_v42 = vsel %vm539_vm15, %v540_v41, %v538_v25 }
 0x114   : > { %477 = vst.msk [vmem:[%s398_s13] sm:$0xff] %vm412_vm1, %v476_v40  ;;  %v545_v43 = vsel %vm544_vm3, %v543_v20, %v541_v42 }
 0x115   : > { %v549_v45 = vsel %vm548_vm4, nan, %v545_v43 }
 0x116   : > { %v555_v46 = vsel %vm554_vm6, %v551_v44, %v549_v45 }
 0x117   : > { %v556_v47 = vand.u32 2147483647, %v555_v46 }
 0x119   : > { %v558_v48 = vor.u32 %v557_v39, %v556_v47 }
 0x11b   : > { %559 = vst.msk [vmem:[%s398_s13 + $0x8] sm:$0xff] %vm412_vm1, %v558_v48 }
 0x11c PF: > { %s22_s23 = sadd.s32 1, %s1045_s23   ;;  %s1352_s18 = smov %s1029_s19 }
 0x11d   : > { %p19_p9 = scmp.ge.s32.totalorder %s22_s23, 4   ;;  %s1353_s19 = smov %s1033_s20 }
 0x11e   : > { %s1354_s20 = smov %s1134_s30  ;;  %s1355_s21 = smov %s1041_s22 }
 0x11f   : > { %s1356_s22 = smov %s1358_s25  ;;  %21 = sbr.rel (!%p19_p9) target bundleno = 6 (0x6), region = 117 }
 0x126   :  { %665 = vsyncpa [#allocation4], 1 }
 0x127   :  { %667 = vsyncpa [#allocation4 + $0x1], 1 }
 0x128   :  { %668 = vsyncpa [#allocation6], 1 }
 0x129   :  { %670 = vsyncpa [#allocation6 + $0x1], 1 }

</bundles_post_ra>
